<compile_context>
chip_gen: v6e
topology: v6e:2x2x1
jax: 0.10.0
libtpu: 0.0.40
codegen_flags: <defaults>
</compile_context>

<pallas_src>
import jax
import jax.numpy as jnp
from jax.experimental import pallas as pl
from jax.experimental.pallas import tpu as pltpu

BN_EPS = 1e-5
FP = 128  # lane-dense padded feature width (input feats, hidden, classes all pad to this)


# ---------------- fused Pallas kernel (hot path) ----------------

def fused_gcn_kernel(a_ref, x0_ref, w_ref, b_ref, scale_ref, shift_ref,
                     p_ref, w1_ref, b1_ref, w2_ref, b2_ref,
                     out_ref, x_scr):
    """One grid step == one GCN layer; head is fused into the last step.

    a_ref:  [N, N]  bf16  normalized adjacency (resident across the layer loop)
    x0_ref: [N, FP] f32   initial node features (read at layer 0 only)
    w_ref:  [FP, FP] bf16 (squeezed from [L, FP, FP]), b/scale/shift: [1, FP] f32
    p_ref:  [G, N]  f32   mean-pool matrix
    w1/b1/w2/b2: MLP head params, lane-padded to FP
    out_ref:[G, FP] f32   (caller slices to num_classes)
    x_scr:  [N, FP] f32   VMEM scratch holding the running node features
    """
    l = pl.program_id(0)

    @pl.when(l == 0)
    def _():
        x_scr[...] = x0_ref[...]

    # GCNConv: h = A_hat @ (X @ W) + b   (bf16 MXU, f32 accumulation)
    xw = jnp.dot(x_scr[...].astype(jnp.bfloat16), w_ref[...],
                 preferred_element_type=jnp.float32)
    h = jnp.dot(a_ref[...], xw.astype(jnp.bfloat16),
                preferred_element_type=jnp.float32) + b_ref[...]
    # Module order: conv -> ReLU -> BN (eval BN folded to scale/shift in wrapper).
    h = jnp.maximum(h, 0.0)
    x_scr[...] = h * scale_ref[...] + shift_ref[...]

    # Fused head on the last layer: global mean pool + lin1 + ReLU + (dropout=id) + lin2.
    @pl.when(l == pl.num_programs(0) - 1)
    def _():
        pooled = jnp.dot(p_ref[...], x_scr[...], preferred_element_type=jnp.float32)
        z = jnp.dot(pooled, w1_ref[...], preferred_element_type=jnp.float32) + b1_ref[...]
        z = jnp.maximum(z, 0.0)
        out_ref[...] = (jnp.dot(z, w2_ref[...], preferred_element_type=jnp.float32)
                        + b2_ref[...])


# ---------------- wrapper ----------------

def _pad2(m, rows, cols):
    return jnp.pad(m, ((0, rows - m.shape[0]), (0, cols - m.shape[1])))


def gcn_fused(a_hat, x, pool, conv_params, bn_params, lin1_w, lin1_b, lin2_w, lin2_b):
    n = x.shape[0]
    g = pool.shape[0]
    num_layers = len(conv_params)
    num_classes = lin2_w.shape[1]

    # Lane-dense zero-padding of every feature-dim operand (exact: padded cols stay 0).
    x_p = _pad2(x.astype(jnp.float32), n, FP)
    w_stack = jnp.stack([_pad2(c["w"], FP, FP) for c in conv_params]).astype(jnp.bfloat16)
    b_stack = jnp.stack([_pad2(c["b"], 1, FP) for c in conv_params])

    scales, shifts = [], []
    for bn in bn_params:
        scale = bn["gamma"] * jax.lax.rsqrt(bn["var"] + BN_EPS)
        shift = bn["beta"] - bn["mean"] * scale
        scales.append(_pad2(scale, 1, FP))
        shifts.append(_pad2(shift, 1, FP))
    scale_stack = jnp.stack(scales)
    shift_stack = jnp.stack(shifts)

    w1_p = _pad2(lin1_w, FP, FP)
    b1_p = _pad2(lin1_b, 1, FP)
    w2_p = _pad2(lin2_w, FP, FP)
    b2_p = _pad2(lin2_b, 1, FP)
    a_bf16 = a_hat.astype(jnp.bfloat16)
    pool_f32 = pool.astype(jnp.float32)

    flops = (num_layers * (2 * n * FP * FP + 2 * n * n * FP)
             + 2 * g * n * FP + 4 * g * FP * FP)
    bytes_accessed = (a_bf16.size * 2 + x_p.size * 4 + w_stack.size * 2
                      + (b_stack.size + scale_stack.size + shift_stack.size) * 4
                      + pool_f32.size * 4
                      + (w1_p.size + b1_p.size + w2_p.size + b2_p.size) * 4
                      + g * FP * 4)

    const2 = lambda l: (0, 0)
    per_layer3 = lambda l: (l, 0, 0)

    out = pl.pallas_call(
        fused_gcn_kernel,
        out_shape=jax.ShapeDtypeStruct((g, FP), jnp.float32),
        grid=(num_layers,),
        in_specs=[
            pl.BlockSpec((n, n), const2),               # A_hat   (resident, bf16)
            pl.BlockSpec((n, FP), const2),              # X0      (resident)
            pl.BlockSpec((None, FP, FP), per_layer3),   # W_l
            pl.BlockSpec((None, 1, FP), per_layer3),    # b_l
            pl.BlockSpec((None, 1, FP), per_layer3),    # BN scale_l
            pl.BlockSpec((None, 1, FP), per_layer3),    # BN shift_l
            pl.BlockSpec((g, n), const2),               # pool matrix
            pl.BlockSpec((FP, FP), const2),             # lin1 W
            pl.BlockSpec((1, FP), const2),              # lin1 b
            pl.BlockSpec((FP, FP), const2),             # lin2 W
            pl.BlockSpec((1, FP), const2),              # lin2 b
        ],
        out_specs=pl.BlockSpec((g, FP), const2),
        scratch_shapes=[pltpu.VMEM((n, FP), jnp.float32)],
        compiler_params=pltpu.CompilerParams(
            # Layer axis is a sequential dependency -> arbitrary (not megacore-parallel).
            dimension_semantics=("arbitrary",)),
        cost_estimate=pl.CostEstimate(
            flops=flops, transcendentals=0, bytes_accessed=bytes_accessed),
    )(a_bf16, x_p, w_stack, b_stack, scale_stack, shift_stack,
      pool_f32, w1_p, b1_p, w2_p, b2_p)
    return out[:, :num_classes]


# ---------------- plain-JAX glue ----------------

def normalized_adjacency(edge_index, num_nodes):
    """Dense D^-1/2 (A + I) D^-1/2 from edge_index [2, E] (src, dst).

    Assumes edge_index already contains both directions for undirected graphs
    (duplicate edges collapse to 1, matching a 0/1 adjacency)."""
    src, dst = edge_index
    a = jnp.zeros((num_nodes, num_nodes), jnp.float32).at[dst, src].set(1.0)
    a = a + jnp.eye(num_nodes, dtype=jnp.float32)            # self loops
    deg = jnp.sum(a, axis=1)
    d_inv_sqrt = jnp.where(deg > 0, jax.lax.rsqrt(deg), 0.0)
    return a * d_inv_sqrt[:, None] * d_inv_sqrt[None, :]


def mean_pool_matrix(batch_indice, num_graphs):
    """P [G, N] with P[g, n] = 1/|graph g| if node n belongs to graph g."""
    onehot = (batch_indice[None, :] == jnp.arange(num_graphs)[:, None]).astype(jnp.float32)
    counts = jnp.maximum(jnp.sum(onehot, axis=1, keepdims=True), 1.0)
    return onehot / counts


def init_params(key, num_node_features, hidden, num_classes, num_layers=6):
    params = {"conv": [], "bn": []}
    dims = [num_node_features] + [hidden] * num_layers
    for i in range(num_layers):
        key, kw, kb = jax.random.split(key, 3)
        params["conv"].append({
            "w": jax.random.normal(kw, (dims[i], dims[i + 1]), jnp.float32) * 0.1,
            "b": jax.random.normal(kb, (1, dims[i + 1]), jnp.float32) * 0.1,
        })
        key, kg, kbt, km, kv = jax.random.split(key, 5)
        params["bn"].append({
            "gamma": jax.random.uniform(kg, (1, hidden), jnp.float32, 0.5, 1.5),
            "beta": jax.random.normal(kbt, (1, hidden), jnp.float32) * 0.1,
            "mean": jax.random.normal(km, (1, hidden), jnp.float32) * 0.1,
            "var": jax.random.uniform(kv, (1, hidden), jnp.float32, 0.5, 1.5),
        })
    key, k1, k2, k3, k4 = jax.random.split(key, 5)
    params["lin1_w"] = jax.random.normal(k1, (hidden, hidden), jnp.float32) * 0.1
    params["lin1_b"] = jax.random.normal(k2, (1, hidden), jnp.float32) * 0.1
    params["lin2_w"] = jax.random.normal(k3, (hidden, num_classes), jnp.float32) * 0.1
    params["lin2_b"] = jax.random.normal(k4, (1, num_classes), jnp.float32) * 0.1
    return params


def gcn_forward(params, x, edge_index, batch_indice, num_graphs):
    n = x.shape[0]
    a_hat = normalized_adjacency(edge_index, n)
    pool = mean_pool_matrix(batch_indice, num_graphs)
    return gcn_fused(a_hat, x, pool, params["conv"], params["bn"],
                     params["lin1_w"], params["lin1_b"],
                     params["lin2_w"], params["lin2_b"])


if __name__ == "__main__":
    num_node_features = 8
    hidden_channels = 32
    num_classes = 4
    nodes_per_graph = 8
    num_graphs = 2
    num_nodes = nodes_per_graph * num_graphs

    key = jax.random.PRNGKey(0)
    key, kx = jax.random.split(key)
    x = jax.random.normal(kx, (num_nodes, num_node_features), jnp.float32)

    # ring edges inside each graph (both directions), deterministic
    src, dst = [], []
    for g in range(num_graphs):
        off = g * nodes_per_graph
        for i in range(nodes_per_graph):
            a, b = off + i, off + (i + 1) % nodes_per_graph
            src += [a, b]
            dst += [b, a]
    edge_index = jnp.array([src, dst], dtype=jnp.int32)

    batch_indice = jnp.repeat(jnp.arange(num_graphs, dtype=jnp.int32), nodes_per_graph)

    params = init_params(key, num_node_features, hidden_channels, num_classes)

    out = gcn_forward(params, x, edge_index, batch_indice, num_graphs)
    out = jax.block_until_ready(out)
    assert out.shape == (num_graphs, num_classes)
    print("KERNEL_OK")
</pallas_src>

<mosaic_0001>
module attributes {stable_mosaic.version = 11 : i64} {
  func.func @fused_gcn_kernel(%arg0: i32, %arg1: memref<16x16xbf16, #tpu.memory_space<vmem>>, %arg2: memref<16x128xf32, #tpu.memory_space<vmem>>, %arg3: memref<1x128x128xbf16, #tpu.memory_space<vmem>>, %arg4: memref<1x1x128xf32, #tpu.memory_space<vmem>>, %arg5: memref<1x1x128xf32, #tpu.memory_space<vmem>>, %arg6: memref<1x1x128xf32, #tpu.memory_space<vmem>>, %arg7: memref<2x16xf32, #tpu.memory_space<vmem>>, %arg8: memref<128x128xf32, #tpu.memory_space<vmem>>, %arg9: memref<1x128xf32, #tpu.memory_space<vmem>>, %arg10: memref<128x128xf32, #tpu.memory_space<vmem>>, %arg11: memref<1x128xf32, #tpu.memory_space<vmem>>, %arg12: memref<2x128xf32, #tpu.memory_space<vmem>>, %arg13: memref<16x128xf32, #tpu.memory_space<vmem>>) attributes {dimension_semantics = [#tpu.dimension_semantics<arbitrary>], iteration_bounds = array<i64: 6>, scalar_prefetch = 0 : i64, scratch_operands = 1 : i64, tpu.core_type = #tpu.core_type<tc>, window_params = [{pipeline_mode = #tpu.pipeline_mode<synchronous>, transform_indices = @transform_0, window_bounds = array<i64: 16, 16>}, {pipeline_mode = #tpu.pipeline_mode<synchronous>, transform_indices = @transform_1, window_bounds = array<i64: 16, 128>}, {transform_indices = @transform_2, window_bounds = array<i64: 1, 128, 128>}, {transform_indices = @transform_3, window_bounds = array<i64: 1, 1, 128>}, {transform_indices = @transform_4, window_bounds = array<i64: 1, 1, 128>}, {transform_indices = @transform_5, window_bounds = array<i64: 1, 1, 128>}, {pipeline_mode = #tpu.pipeline_mode<synchronous>, transform_indices = @transform_6, window_bounds = array<i64: 2, 16>}, {pipeline_mode = #tpu.pipeline_mode<synchronous>, transform_indices = @transform_7, window_bounds = array<i64: 128, 128>}, {pipeline_mode = #tpu.pipeline_mode<synchronous>, transform_indices = @transform_8, window_bounds = array<i64: 1, 128>}, {pipeline_mode = #tpu.pipeline_mode<synchronous>, transform_indices = @transform_9, window_bounds = array<i64: 128, 128>}, {pipeline_mode = #tpu.pipeline_mode<synchronous>, transform_indices = @transform_10, window_bounds = array<i64: 1, 128>}, {pipeline_mode = #tpu.pipeline_mode<synchronous>, transform_indices = @transform_11, window_bounds = array<i64: 2, 128>}]} {
    %c0_i32 = arith.constant 0 : i32
    %0 = arith.cmpi eq, %arg0, %c0_i32 : i32
    %1 = arith.extui %0 : i1 to i32
    %c0_i32_0 = arith.constant 0 : i32
    %2 = arith.cmpi ne, %1, %c0_i32_0 : i32
    scf.if %2 {
      %c0_21 = arith.constant 0 : index
      %c0_22 = arith.constant 0 : index
      %29 = vector.load %arg2[%c0_21, %c0_22] : memref<16x128xf32, #tpu.memory_space<vmem>>, vector<16x128xf32>
      %c0_23 = arith.constant 0 : index
      %c0_24 = arith.constant 0 : index
      %30 = vector.load %arg13[%c0_23, %c0_24] : memref<16x128xf32, #tpu.memory_space<vmem>>, vector<16x128xf32>
      tpu.vector_store %arg13[%c0_23, %c0_24], %29 {strides = array<i32>} : memref<16x128xf32, #tpu.memory_space<vmem>>, vector<16x128xf32>,
    } else {
    }
    %c0 = arith.constant 0 : index
    %c0_1 = arith.constant 0 : index
    %3 = vector.load %arg13[%c0, %c0_1] : memref<16x128xf32, #tpu.memory_space<vmem>>, vector<16x128xf32>
    %4 = arith.truncf %3 : vector<16x128xf32> to vector<16x128xbf16>
    %c0_2 = arith.constant 0 : index
    %c0_3 = arith.constant 0 : index
    %c0_4 = arith.constant 0 : index
    %5 = vector.load %arg3[%c0_2, %c0_3, %c0_4] : memref<1x128x128xbf16, #tpu.memory_space<vmem>>, vector<1x128x128xbf16>
    %6 = vector.shape_cast %5 : vector<1x128x128xbf16> to vector<128x128xbf16>
    %cst = arith.constant dense<0.000000e+00> : vector<16x128xf32>
    %7 = tpu.matmul %4, %6, %cst {dimension_numbers = #tpu.dot_dimension_numbers<[1], [0], [0], [1], [0, 0, 1, 1], [], []>} : vector<16x128xbf16>, vector<128x128xbf16>, vector<16x128xf32> -> vector<16x128xf32>
    %c0_5 = arith.constant 0 : index
    %c0_6 = arith.constant 0 : index
    %8 = vector.load %arg1[%c0_5, %c0_6] : memref<16x16xbf16, #tpu.memory_space<vmem>>, vector<16x16xbf16>
    %9 = arith.truncf %7 : vector<16x128xf32> to vector<16x128xbf16>
    %cst_7 = arith.constant dense<0.000000e+00> : vector<16x128xf32>
    %10 = tpu.matmul %8, %9, %cst_7 {dimension_numbers = #tpu.dot_dimension_numbers<[1], [0], [0], [1], [0, 0, 1, 1], [], []>} : vector<16x16xbf16>, vector<16x128xbf16>, vector<16x128xf32> -> vector<16x128xf32>
    %c0_8 = arith.constant 0 : index
    %c0_9 = arith.constant 0 : index
    %c0_10 = arith.constant 0 : index
    %11 = vector.load %arg4[%c0_8, %c0_9, %c0_10] : memref<1x1x128xf32, #tpu.memory_space<vmem>>, vector<1x1x128xf32>
    %12 = vector.shape_cast %11 : vector<1x1x128xf32> to vector<1x128xf32>
    %13 = vector.broadcast %12 : vector<1x128xf32> to vector<16x128xf32>
    %14 = arith.addf %10, %13 : vector<16x128xf32>
    %cst_11 = arith.constant 0.000000e+00 : f32
    %15 = vector.broadcast %cst_11 : f32 to vector<16x128xf32>
    %16 = arith.maximumf %14, %15 : vector<16x128xf32>
    %c0_12 = arith.constant 0 : index
    %c0_13 = arith.constant 0 : index
    %c0_14 = arith.constant 0 : index
    %17 = vector.load %arg5[%c0_12, %c0_13, %c0_14] : memref<1x1x128xf32, #tpu.memory_space<vmem>>, vector<1x1x128xf32>
    %18 = vector.shape_cast %17 : vector<1x1x128xf32> to vector<1x128xf32>
    %19 = vector.broadcast %18 : vector<1x128xf32> to vector<16x128xf32>
    %20 = arith.mulf %16, %19 : vector<16x128xf32>
    %c0_15 = arith.constant 0 : index
    %c0_16 = arith.constant 0 : index
    %c0_17 = arith.constant 0 : index
    %21 = vector.load %arg6[%c0_15, %c0_16, %c0_17] : memref<1x1x128xf32, #tpu.memory_space<vmem>>, vector<1x1x128xf32>
    %22 = vector.shape_cast %21 : vector<1x1x128xf32> to vector<1x128xf32>
    %23 = vector.broadcast %22 : vector<1x128xf32> to vector<16x128xf32>
    %24 = arith.addf %20, %23 : vector<16x128xf32>
    %c0_18 = arith.constant 0 : index
    %c0_19 = arith.constant 0 : index
    %25 = vector.load %arg13[%c0_18, %c0_19] : memref<16x128xf32, #tpu.memory_space<vmem>>, vector<16x128xf32>
    tpu.vector_store %arg13[%c0_18, %c0_19], %24 {strides = array<i32>} : memref<16x128xf32, #tpu.memory_space<vmem>>, vector<16x128xf32>,
    %c5_i32 = arith.constant 5 : i32
    %26 = arith.cmpi eq, %arg0, %c5_i32 : i32
    %27 = arith.extui %26 : i1 to i32
    %c0_i32_20 = arith.constant 0 : i32
    %28 = arith.cmpi ne, %27, %c0_i32_20 : i32
    scf.if %28 {
      %c0_21 = arith.constant 0 : index
      %c0_22 = arith.constant 0 : index
      %29 = vector.load %arg7[%c0_21, %c0_22] : memref<2x16xf32, #tpu.memory_space<vmem>>, vector<2x16xf32>
      %c0_23 = arith.constant 0 : index
      %c0_24 = arith.constant 0 : index
      %30 = vector.load %arg13[%c0_23, %c0_24] : memref<16x128xf32, #tpu.memory_space<vmem>>, vector<16x128xf32>
      %cst_25 = arith.constant dense<0.000000e+00> : vector<2x128xf32>
      %31 = tpu.matmul %29, %30, %cst_25 {dimension_numbers = #tpu.dot_dimension_numbers<[1], [0], [0], [1], [0, 0, 1, 1], [], []>} : vector<2x16xf32>, vector<16x128xf32>, vector<2x128xf32> -> vector<2x128xf32>
      %c0_26 = arith.constant 0 : index
      %c0_27 = arith.constant 0 : index
      %32 = vector.load %arg8[%c0_26, %c0_27] : memref<128x128xf32, #tpu.memory_space<vmem>>, vector<128x128xf32>
      %cst_28 = arith.constant dense<0.000000e+00> : vector<2x128xf32>
      %33 = tpu.matmul %31, %32, %cst_28 {dimension_numbers = #tpu.dot_dimension_numbers<[1], [0], [0], [1], [0, 0, 1, 1], [], []>} : vector<2x128xf32>, vector<128x128xf32>, vector<2x128xf32> -> vector<2x128xf32>
      %c0_29 = arith.constant 0 : index
      %c0_30 = arith.constant 0 : index
      %34 = vector.load %arg9[%c0_29, %c0_30] : memref<1x128xf32, #tpu.memory_space<vmem>>, vector<1x128xf32>
      %35 = vector.broadcast %34 : vector<1x128xf32> to vector<2x128xf32>
      %36 = arith.addf %33, %35 : vector<2x128xf32>
      %cst_31 = arith.constant 0.000000e+00 : f32
      %37 = vector.broadcast %cst_31 : f32 to vector<2x128xf32>
      %38 = arith.maximumf %36, %37 : vector<2x128xf32>
      %c0_32 = arith.constant 0 : index
      %c0_33 = arith.constant 0 : index
      %39 = vector.load %arg10[%c0_32, %c0_33] : memref<128x128xf32, #tpu.memory_space<vmem>>, vector<128x128xf32>
      %cst_34 = arith.constant dense<0.000000e+00> : vector<2x128xf32>
      %40 = tpu.matmul %38, %39, %cst_34 {dimension_numbers = #tpu.dot_dimension_numbers<[1], [0], [0], [1], [0, 0, 1, 1], [], []>} : vector<2x128xf32>, vector<128x128xf32>, vector<2x128xf32> -> vector<2x128xf32>
      %c0_35 = arith.constant 0 : index
      %c0_36 = arith.constant 0 : index
      %41 = vector.load %arg11[%c0_35, %c0_36] : memref<1x128xf32, #tpu.memory_space<vmem>>, vector<1x128xf32>
      %42 = vector.broadcast %41 : vector<1x128xf32> to vector<2x128xf32>
      %43 = arith.addf %40, %42 : vector<2x128xf32>
      %c0_37 = arith.constant 0 : index
      %c0_38 = arith.constant 0 : index
      %44 = vector.load %arg12[%c0_37, %c0_38] : memref<2x128xf32, #tpu.memory_space<vmem>>, vector<2x128xf32>
      tpu.vector_store %arg12[%c0_37, %c0_38], %43 {strides = array<i32>} : memref<2x128xf32, #tpu.memory_space<vmem>>, vector<2x128xf32>,
    } else {
    }
    return
  }
  func.func @transform_0(%arg0: i32) -> (i32, i32) {
    %c0_i32 = arith.constant 0 : i32
    %c0_i32_0 = arith.constant 0 : i32
    %c0_i32_1 = arith.constant 0 : i32
    return %c0_i32, %c0_i32_0 : i32, i32
  }
  func.func @transform_1(%arg0: i32) -> (i32, i32) {
    %c0_i32 = arith.constant 0 : i32
    %c0_i32_0 = arith.constant 0 : i32
    %c0_i32_1 = arith.constant 0 : i32
    return %c0_i32, %c0_i32_0 : i32, i32
  }
  func.func @transform_2(%arg0: i32) -> (i32, i32, i32) {
    %c0_i32 = arith.constant 0 : i32
    %c0_i32_0 = arith.constant 0 : i32
    %c0_i32_1 = arith.constant 0 : i32
    return %arg0, %c0_i32, %c0_i32_0 : i32, i32, i32
  }
  func.func @transform_3(%arg0: i32) -> (i32, i32, i32) {
    %c0_i32 = arith.constant 0 : i32
    %c0_i32_0 = arith.constant 0 : i32
    %c0_i32_1 = arith.constant 0 : i32
    return %arg0, %c0_i32, %c0_i32_0 : i32, i32, i32
  }
  func.func @transform_4(%arg0: i32) -> (i32, i32, i32) {
    %c0_i32 = arith.constant 0 : i32
    %c0_i32_0 = arith.constant 0 : i32
    %c0_i32_1 = arith.constant 0 : i32
    return %arg0, %c0_i32, %c0_i32_0 : i32, i32, i32
  }
  func.func @transform_5(%arg0: i32) -> (i32, i32, i32) {
    %c0_i32 = arith.constant 0 : i32
    %c0_i32_0 = arith.constant 0 : i32
    %c0_i32_1 = arith.constant 0 : i32
    return %arg0, %c0_i32, %c0_i32_0 : i32, i32, i32
  }
  func.func @transform_6(%arg0: i32) -> (i32, i32) {
    %c0_i32 = arith.constant 0 : i32
    %c0_i32_0 = arith.constant 0 : i32
    %c0_i32_1 = arith.constant 0 : i32
    return %c0_i32, %c0_i32_0 : i32, i32
  }
  func.func @transform_7(%arg0: i32) -> (i32, i32) {
    %c0_i32 = arith.constant 0 : i32
    %c0_i32_0 = arith.constant 0 : i32
    %c0_i32_1 = arith.constant 0 : i32
    return %c0_i32, %c0_i32_0 : i32, i32
  }
  func.func @transform_8(%arg0: i32) -> (i32, i32) {
    %c0_i32 = arith.constant 0 : i32
    %c0_i32_0 = arith.constant 0 : i32
    %c0_i32_1 = arith.constant 0 : i32
    return %c0_i32, %c0_i32_0 : i32, i32
  }
  func.func @transform_9(%arg0: i32) -> (i32, i32) {
    %c0_i32 = arith.constant 0 : i32
    %c0_i32_0 = arith.constant 0 : i32
    %c0_i32_1 = arith.constant 0 : i32
    return %c0_i32, %c0_i32_0 : i32, i32
  }
  func.func @transform_10(%arg0: i32) -> (i32, i32) {
    %c0_i32 = arith.constant 0 : i32
    %c0_i32_0 = arith.constant 0 : i32
    %c0_i32_1 = arith.constant 0 : i32
    return %c0_i32, %c0_i32_0 : i32, i32
  }
  func.func @transform_11(%arg0: i32) -> (i32, i32) {
    %c0_i32 = arith.constant 0 : i32
    %c0_i32_0 = arith.constant 0 : i32
    %c0_i32_1 = arith.constant 0 : i32
    return %c0_i32, %c0_i32_0 : i32, i32
  }
}

</mosaic_0001>

<bundles_post_ra>
// kernel: tpu_custom_call.1
= control target key start
LH: loop header
LB: loop body
LE: loop exit
PB: predicated region body
PF: predicated region fallthrough
CT: control target
= control target key end

     0   :  { %s2109_s0 = inlined_call_operand.hbm [shape: bf16[16,16], index: 0, kind: input, shape index: {}]   ;;  %s2110_s1 = inlined_call_operand.hbm [shape: f32[16,128], index: 1, kind: input, shape index: {}]   ;;  %s2111_s2 = inlined_call_operand.hbm [shape: bf16[6,128,128], index: 2, kind: input, shape index: {}]   ;;  %s2112_s3 = inlined_call_operand.hbm [shape: f32[6,1,128], index: 3, kind: input, shape index: {}]   ;;  %s2113_s4 = inlined_call_operand.vmem [shape: f32[6,1,128], index: 4, kind: input, shape index: {}]   ;;  %s2114_s5 = inlined_call_operand.hbm [shape: f32[6,1,128], index: 5, kind: input, shape index: {}]   ;;  %s2115_s6 = inlined_call_operand.vmem [shape: f32[2,16], index: 6, kind: input, shape index: {}]   ;;  %s2116_s7 = inlined_call_operand.hbm [shape: f32[128,128], index: 7, kind: input, shape index: {}]   ;;  %s2117_s8 = inlined_call_operand.vmem [shape: f32[1,128], index: 8, kind: input, shape index: {}]   ;;  %s2118_s9 = inlined_call_operand.hbm [shape: f32[128,128], index: 9, kind: input, shape index: {}]   ;;  %s2119_s10 = inlined_call_operand.vmem [shape: f32[1,128], index: 10, kind: input, shape index: {}]   ;;  %s2120_s11 = inlined_call_operand.hbm [shape: f32[2,128], index: 11, kind: output, shape index: {}]  }
   0x1   :  { %2133 = sst [smem:[#allocation24_spill]] %s2109_s0 }
   0x2   :  { %2134 = sst [smem:[#allocation25_spill]] %s2111_s2 }
   0x3   :  { %2135 = sst [smem:[#allocation26_spill]] %s2115_s6 }
   0x4   :  { %2136 = sst [smem:[#allocation27_spill]] %s2117_s8 }
   0x5   :  { %2137 = sst [smem:[#allocation28_spill]] %s2119_s10 }
   0x6   :  { %2138 = sst [smem:[#allocation29_spill]] %s2120_s11 }
   0x7   :  { %16 = vsyncpa [#allocation4], 0 }
   0x8   :  { %17 = vsyncpa [#allocation7], 0 }
   0x9   :  { %18 = vsyncpa [#allocation13], 0 }
   0xa   :  { %19 = vsyncpa [#allocation5], 0  ;;  %s1780_s17 = smov 0   ;;  %s1782_s18 = smov 0  }
   0xb   :  { %s1784_s19 = smov 0   ;;  %s1786_s20 = smov 0  }
   0xc LB: > { %2139 = sst [smem:[#allocation21_spill]] %s1698_s19  ;;  %s1799_s21 = sadd.s32 4294967295, %s1702_s20   ;;  %s1702_s20 = sphi %s1786_s20, %s2171_s20   ;;  %s1698_s19 = sphi %s1784_s19, %s2173_s19   ;;  %s1694_s18 = sphi %s1782_s18, %s2175_s18   ;;  %s1690_s17 = sphi %s1780_s17, %s2174_s17  }
   0xd   : > { %p87_p0 = scmp.ne.s32.totalorder %s1694_s18, %s1690_s17  ;;  %p2125_p1 = scmp.eq.s32.totalorder %s1799_s21, 0 }
   0xe   : > { %p1131_p2 = scmp.ge.s32.totalorder %s1702_s20, 1  ;;  %p302_p3 = scmp.lt.s32.totalorder %s1702_s20, 7 }
   0xf   : > { %p1808_p5 = por %p2125_p1, %p87_p0  ;;  %s1704_s24 = smov [#allocation3]  }
  0x10   : > { %p1812_p6 = pnand %p1131_p2, %p302_p3  ;;  %s314_s25 = sshll.u32 %s1704_s24, 4  ;;  %s315_s25 = int_to_ptr.vmem [resolvable:$true] %s314_s25 }
  0x11   : > { %s2140_s22 = scalar_select %p1808_p5, 1, 0 }
  0x12   : > { %s2141_s23 = scalar_select %p1812_p6, 1, 0 }
  0x13   : > { %p1348_p7 = pneg %p1812_p6  ;;  %s1825_s27 = sadd.s32 1, %s1702_s20  }
  0x14   : > { %2143 = sst [smem:[#allocation22_spill]] %s1825_s27  ;;  %s74_s28 = sadd.s32 1, %s1698_s19 }
  0x15   : > { %p1820_p8 = pnand %p1348_p7, %p2125_p1  ;;  %s71_s29 = ssub.s32 %s1702_s20, %s1825_s27 }
  0x16   : > { %s1447_s30 = scalar_lea.vmem %s315_s25, 128  ;;  %p1455_p13 = scmp.lt.s32.totalorder %s315_s25, %s315_s25 }
  0x17   : > { %s2142_s26 = scalar_select %p1820_p8, 1, 0 }
  0x18   : > { %p2126_p9 = pneg %p1820_p8  ;;  %p1448_p10 = scmp.ne.s32.totalorder %s315_s25, %s1447_s30 }
  0x19   : > { %p1456_p0 = scmp.lt.s32.totalorder %s1447_s30, %s1447_s30 }
  0x1a   : > { %p1450_p11 = pnand %p1448_p10, %p2126_p9 }
  0x1b   : > { %p1457_p2 = por %p1456_p0, %p1455_p13 }
  0x1c   : > { %p1451_p12 = pneg %p1450_p11 }
  0x1e   : > { %p1458_p3 = pnand %p1457_p2, %p1451_p12 }
  0x20   : > { %1461 = shalt.err (!%p1458_p3)
}
  0x21   : > { %s2123_s12 = smov 64   ;;  %s2124_s13 = smov 4  }
  0x22   : > { %s2144_s0 = sld [smem:[#allocation24_spill]]  ;;  %p72_p7 = scmp.eq.s32.totalorder %s71_s29, 0 }
  0x23   : > { %p81_p10 = scmp.ne.s32.totalorder %s1698_s19, %s1694_s18  ;;  %p82_p11 = scmp.eq.s32.totalorder %s1702_s20, 0 }
  0x24   : > { %p1375_p12 = scmp.lt.s32.totalorder %s1702_s20, 6  ;;  %s376_s17 = sand.u32 1, %s1702_s20  }
  0x25   : > { %s1848_s16 = scalar_select %p72_p7, %s1698_s19, %s74_s28  }
  0x26   : > { %p83_p13 = por %p82_p11, %p81_p10  ;;  %s1852_s24 = sand.u32 1, %s1698_s19  }
  0x27   : > { %2145 = sst [smem:[#allocation23_spill]] %s1848_s16  ;;  %s1137_s30 = sshll.u32 %s1852_s24, 6 }
  0x28   : > { %1351 = dma.hbm_to_vmem [thread:$0]  (!%p1820_p8), %s2144_s0, 128, %s315_s25, [#allocation4], %s2123_s12, %s2123_s12, %s2124_s13  }
  0x29   : > { %s1170_s27 = sshll.u32 %s1702_s20, 10  ;;  %s2146_s2 = sld [smem:[#allocation25_spill]] }
  0x2a   : > { %s380_s25 = scalar_lea.vmem [#allocation8], %s1137_s30  ;;  %p1861_p0 = pnand %p1375_p12, %p83_p13 }
  0x2b   : > { %s387_s29 = sshll.u32 %s380_s25, 4  ;;  %s1707_s14 = smov [#allocation6]   ;;  %s1865_s29 = int_to_ptr.vmem [resolvable:$true] %s387_s29 }
  0x2c   : > { %s1867_s15 = sshll.u32 %s1707_s14, 4  ;;  %s1869_s12 = scalar_lea.sflag [#allocation4], %s376_s17  ;;  %s328_s15 = int_to_ptr.vmem [resolvable:$true] %s1867_s15 }
  0x2d   : > { %p1875_p3 = pneg %p1861_p0 }
  0x2f   : > { %s1859_s8 = scalar_lea.hbm %s2146_s2, %s1170_s27  ;;  %s1467_s25 = scalar_lea.hbm %s2146_s2, 6144 }
  0x30   : > { %s1462_s10 = scalar_lea.hbm %s1859_s8, 1024  ;;  %p1468_p11 = scmp.lt.s32.totalorder %s1859_s8, %s2146_s2 }
  0x31   : > { %p1463_p2 = scmp.ne.s32.totalorder %s1859_s8, %s1462_s10  ;;  %p1469_p12 = scmp.lt.s32.totalorder %s1467_s25, %s1462_s10 }
  0x33   : > { %p1465_p7 = pnand %p1875_p3, %p1463_p2  ;;  %p1470_p13 = por %p1469_p12, %p1468_p11 }
  0x35   : > { %p1466_p10 = pneg %p1465_p7 }
  0x37   : > { %p1471_p4 = pnand %p1470_p13, %p1466_p10 }
  0x39   : > { %1474 = shalt.err (!%p1471_p4)
}
  0x3a   : > { %s1475_s17 = scalar_lea.vmem %s1865_s29, 1024  ;;  %s1708_s0 = smov [#allocation8]  }
  0x3b   : > { %p1476_p1 = scmp.ne.s32.totalorder %s1865_s29, %s1475_s17  ;;  %s1480_s27 = sshll.u32 %s1708_s0, 4  ;;  %s1481_s27 = int_to_ptr.vmem [resolvable:$false] %s1480_s27 }
  0x3c   : > { %s1482_s30 = scalar_lea.vmem %s1481_s27, 2048  ;;  %p1483_p9 = scmp.lt.s32.totalorder %s1865_s29, %s1481_s27 }
  0x3d   : > { %p1478_p2 = pnand %p1476_p1, %p1875_p3  ;;  %p1484_p5 = scmp.lt.s32.totalorder %s1482_s30, %s1475_s17 }
  0x3f   : > { %p1479_p7 = pneg %p1478_p2  ;;  %p1485_p6 = por %p1484_p5, %p1483_p9 }
  0x41   : > { %p1486_p8 = pnand %p1485_p6, %p1479_p7 }
  0x43   : > { %1489 = shalt.err (!%p1486_p8)
}
  0x44   : > { %s2149_s13 = smov 4   ;;  %s2150_s10 = smov 64  }
  0x45   : > { %1364 = dma.hbm_to_vmem [thread:$0]  (!%p1861_p0), %s1859_s8, 1024, %s1865_s29, %s1869_s12, %s2150_s10, %s2150_s10, %s2149_s13  }
  0x46   : > { %s1501_s0 = scalar_lea.vmem %s328_s15, 256  ;;  %p2151_p4 = scmp.ne.s32.totalorder %s2142_s26, 0 }
  0x47   : > { %p1502_p1 = scmp.ne.s32.totalorder %s328_s15, %s1501_s0  ;;  %p1509_p6 = scmp.lt.s32.totalorder %s328_s15, %s328_s15 }
  0x48   : > { %p2152_p10 = pneg %p2151_p4  ;;  %p1510_p8 = scmp.lt.s32.totalorder %s1501_s0, %s1501_s0 }
  0x4a   : > { %p1504_p11 = pnand %p1502_p1, %p2152_p10  ;;  %p1511_p9 = por %p1510_p8, %p1509_p6 }
  0x4c   : > { %p1505_p5 = pneg %p1504_p11 }
  0x4e   : > { %p1512_p12 = pnand %p1511_p9, %p1505_p5 }
  0x50   : > { %1515 = shalt.err (!%p1512_p12)
}
  0x51   : > { %s1709_s25 = smov 128   ;;  %s1710_s14 = smov 8  }
  0x52   : > { %1354 = dma.hbm_to_vmem [thread:$0]  (!%p2151_p4), %s2110_s1, 256, %s328_s15, [#allocation7], %s1709_s25, %s1709_s25, %s1710_s14  }
  0x53   : > { %s1140_s17 = sshll.u32 %s1702_s20, 4  ;;  %s400_s27 = scalar_lea.vmem [#allocation9], %s1852_s24 }
  0x54   : > { %s407_s30 = sshll.u32 %s400_s27, 4  ;;  %s405_s0 = scalar_lea.hbm %s2112_s3, %s1140_s17  ;;  %s408_s30 = int_to_ptr.vmem [resolvable:$true] %s407_s30 }
  0x55   : > { %s1516_s2 = scalar_lea.hbm %s405_s0, 16  ;;  %s1521_s6 = scalar_lea.hbm %s2112_s3, 96 }
  0x56   : > { %p1517_p13 = scmp.ne.s32.totalorder %s405_s0, %s1516_s2  ;;  %p1522_p1 = scmp.lt.s32.totalorder %s405_s0, %s2112_s3 }
  0x57   : > { %p1523_p10 = scmp.lt.s32.totalorder %s1521_s6, %s1516_s2 }
  0x58   : > { %p1519_p2 = pnand %p1517_p13, %p1875_p3 }
  0x59   : > { %p1524_p11 = por %p1523_p10, %p1522_p1 }
  0x5a   : > { %p1520_p7 = pneg %p1519_p2 }
  0x5c   : > { %p1525_p5 = pnand %p1524_p11, %p1520_p7 }
  0x5e   : > { %1528 = shalt.err (!%p1525_p5)
}
  0x5f   : > { %s1529_s29 = scalar_lea.vmem %s408_s30, 16  ;;  %s1711_s27 = smov [#allocation9]  }
  0x60   : > { %p1530_p6 = scmp.ne.s32.totalorder %s408_s30, %s1529_s29  ;;  %s1534_s13 = sshll.u32 %s1711_s27, 4  ;;  %s1535_s13 = int_to_ptr.vmem [resolvable:$false] %s1534_s13 }
  0x61   : > { %s1536_s10 = scalar_lea.vmem %s1535_s13, 32  ;;  %p1537_p12 = scmp.lt.s32.totalorder %s408_s30, %s1535_s13 }
  0x62   : > { %p1532_p8 = pnand %p1530_p6, %p1875_p3  ;;  %p1538_p13 = scmp.lt.s32.totalorder %s1536_s10, %s1529_s29 }
  0x64   : > { %p1533_p9 = pneg %p1532_p8  ;;  %p1539_p2 = por %p1538_p13, %p1537_p12 }
  0x66   : > { %p1540_p4 = pnand %p1539_p2, %p1533_p9 }
  0x68   : > { %1543 = shalt.err (!%p1540_p4)
}
  0x69   : > { %1367 = dma.hbm_to_vmem [thread:$0]  (!%p1861_p0), %s405_s0, 16, %s408_s30, %s1869_s12  }
  0x6a   : > { %s1712_s2 = smov [#allocation11]   ;;  %s1713_s19 = smov [#allocation12]  }
  0x6b   : > { %s343_s6 = sshll.u32 %s1712_s2, 4  ;;  %s359_s16 = sshll.u32 %s1713_s19, 4  ;;  %s344_s6 = int_to_ptr.vmem [resolvable:$true] %s343_s6  ;;  %s360_s16 = int_to_ptr.vmem [resolvable:$true] %s359_s16 }
  0x6c   : > { %s1555_s8 = scalar_lea.vmem %s344_s6, 2048  ;;  %p2153_p1 = scmp.ne.s32.totalorder %s2142_s26, 0 }
  0x6d   : > { %p1556_p7 = scmp.ne.s32.totalorder %s344_s6, %s1555_s8  ;;  %p1563_p6 = scmp.lt.s32.totalorder %s344_s6, %s344_s6 }
  0x6e   : > { %p2154_p10 = pneg %p2153_p1  ;;  %p1564_p8 = scmp.lt.s32.totalorder %s1555_s8, %s1555_s8 }
  0x70   : > { %p1558_p11 = pnand %p1556_p7, %p2154_p10  ;;  %p1565_p4 = por %p1564_p8, %p1563_p6 }
  0x72   : > { %p1559_p5 = pneg %p1558_p11 }
  0x74   : > { %p1566_p9 = pnand %p1565_p4, %p1559_p5 }
  0x76   : > { %1569 = shalt.err (!%p1566_p9)
}
  0x77   : > { %1357 = dma.hbm_to_vmem [thread:$0]  (!%p2153_p1), %s2116_s7, 2048, %s344_s6, [#allocation7], %s1709_s25, %s1709_s25, %s1710_s14  }
  0x78   : > { %s1581_s15 = scalar_lea.vmem %s360_s16, 2048  ;;  %p2155_p13 = pmov %p2154_p10 }
  0x79   : > { %p1582_p12 = scmp.ne.s32.totalorder %s360_s16, %s1581_s15  ;;  %p1589_p10 = scmp.lt.s32.totalorder %s360_s16, %s360_s16 }
  0x7a   : > { %p1590_p11 = scmp.lt.s32.totalorder %s1581_s15, %s1581_s15 }
  0x7b   : > { %p1584_p2 = pnand %p1582_p12, %p2155_p13 }
  0x7c   : > { %p1591_p5 = por %p1590_p11, %p1589_p10 }
  0x7d   : > { %p1585_p7 = pneg %p1584_p2 }
  0x7f   : > { %p1592_p6 = pnand %p1591_p5, %p1585_p7 }
  0x81   : > { %1595 = shalt.err (!%p1592_p6)
}
  0x82   : > { %1360 = dma.hbm_to_vmem [thread:$0]  (!%p2153_p1), %s2118_s9, 2048, %s360_s16, [#allocation13], %s1709_s25, %s1709_s25, %s1710_s14  }
  0x83   : > { %s428_s2 = scalar_lea.hbm %s2114_s5, %s1140_s17  ;;  %s423_s6 = scalar_lea.vmem [#allocation10], %s1852_s24 }
  0x84   : > { %s430_s19 = sshll.u32 %s423_s6, 4  ;;  %s1596_s8 = scalar_lea.hbm %s428_s2, 16  ;;  %s431_s19 = int_to_ptr.vmem [resolvable:$true] %s430_s19 }
  0x85   : > { %p1597_p8 = scmp.ne.s32.totalorder %s428_s2, %s1596_s8  ;;  %s1601_s0 = scalar_lea.hbm %s2114_s5, 96 }
  0x86   : > { %p1602_p1 = scmp.lt.s32.totalorder %s428_s2, %s2114_s5  ;;  %p1603_p12 = scmp.lt.s32.totalorder %s1601_s0, %s1596_s8 }
  0x87   : > { %p1599_p4 = pnand %p1597_p8, %p1875_p3 }
  0x88   : > { %p1604_p13 = por %p1603_p12, %p1602_p1 }
  0x89   : > { %p1600_p9 = pneg %p1599_p4 }
  0x8b   : > { %p1605_p2 = pnand %p1604_p13, %p1600_p9 }
  0x8d   : > { %1608 = shalt.err (!%p1605_p2)
}
  0x8e   : > { %s1609_s20 = scalar_lea.vmem %s431_s19, 16  ;;  %s1714_s24 = smov [#allocation10]  }
  0x8f   : > { %p1610_p7 = scmp.ne.s32.totalorder %s431_s19, %s1609_s20  ;;  %s1614_s25 = sshll.u32 %s1714_s24, 4  ;;  %s1615_s25 = int_to_ptr.vmem [resolvable:$false] %s1614_s25 }
  0x90   : > { %s1616_s14 = scalar_lea.vmem %s1615_s25, 32  ;;  %p1617_p5 = scmp.lt.s32.totalorder %s431_s19, %s1615_s25 }
  0x91   : > { %p1612_p10 = pnand %p1610_p7, %p1875_p3  ;;  %p1618_p6 = scmp.lt.s32.totalorder %s1616_s14, %s1609_s20 }
  0x93   : > { %p1613_p11 = pneg %p1612_p10  ;;  %p1619_p8 = por %p1618_p6, %p1617_p5 }
  0x95   : > { %p1620_p4 = pnand %p1619_p8, %p1613_p11 }
  0x97   : > { %1623 = shalt.err (!%p1620_p4)
}
  0x98   : > { %1370 = dma.hbm_to_vmem [thread:$0]  (!%p1861_p0), %s428_s2, 16, %s431_s19, %s1869_s12  }
  0x99   : > { %p2156_p9 = scmp.ne.s32.totalorder %s2141_s23, 0 }
  0x9a   : > { %p2157_p1 = scmp.eq.s32.totalorder (!%p2156_p9), %s1799_s21, 0 }
  0x9b   : > { %439 = sbr.rel (%p2156_p9) target bundleno = 1244 (0x4dc), region = 64 }
  0xa0   : > { %1665 = dma.done.wait (%p2157_p1), [#allocation4], 128   ;;  %p2158_p3 = pmov %p2157_p1 }
  0xa1   : > { %p2159_p12 = pmov %p2157_p1 }
  0xa2   : > { %1667 = vsyncadd (%p2158_p3), [#allocation4], 4294967168 }
  0xa3   : > { %1669 = dma.done.wait (%p2159_p12), [#allocation7], 256   ;;  %p2160_p13 = pmov %p2157_p1 }
  0xa4   : > { %s449_s28 = sand.u32 1, %s1799_s21   ;;  %s1986_s12 = sand.u32 1, %s1694_s18  }
  0xa5   : > { %1671 = vsyncadd (%p2160_p13), [#allocation7], 4294967040  ;;  %s1145_s23 = sshll.u32 %s1986_s12, 6  ;;  %s450_s11 = scalar_lea.sflag [#allocation4], %s449_s28 }
  0xa6   : > { %s1989_s17 = scalar_lea.vmem [#allocation8], %s1145_s23  ;;  %p2161_p0 = scmp.ne.s32.totalorder %s2140_s22, 0 }
  0xa8   : > { %1673 = dma.done.wait (%p2161_p0), %s450_s11, 1056  }
  0xa9   : > { %1675 = vsyncadd (%p2161_p0), %s450_s11, 4294966240  ;;  %s461_s16 = scalar_lea.vmem [#allocation9], %s1986_s12  ;;  %s469_s27 = scalar_lea.vmem [#allocation10], %s1986_s12 }
  0xaa   : > { %p2162_p2 = pmov %p2157_p1 }
  0xab   : > { %p2163_p7 = pmov %p2157_p1 }
  0xac   : > { %1677 = dma.done.wait (%p2162_p2), [#allocation7], 2048  }
  0xad   : > { %1679 = vsyncadd (%p2163_p7), [#allocation7], 4294965248  ;;  %p2164_p10 = pmov %p2157_p1 }
  0xae   : > { %p2165_p11 = pmov %p2157_p1 }
  0xaf   : > { %1681 = dma.done.wait (%p2164_p10), [#allocation13], 2048  }
  0xb0   : > { %1683 = vsyncadd (%p2165_p11), [#allocation13], 4294965248  ;;  %p522_p5 = scmp.lt.s32.totalorder %s1799_s21, 5  ;;  %p2166_p6 = scmp.ne.s32.totalorder %s1799_s21, 0 }
  0xb2   : > { %s2007_s22 = scalar_select %p522_p5, %s1799_s21, 5 }
  0xb3   : > { %529 = sbr.rel (%p2166_p6) target bundleno = 186 (0xba), region = 96 }
  0xb4   : > { %s524_s2 = scalar_lea.vmem %s2113_s4, %s2007_s22 }
  0xb8   : > { %v530_v0 = vld [vmem:[#allocation6] sm:$0xff]  ;;  %v531_v1 = vld [vmem:[#allocation6 + $0x8] sm:$0xff] }
  0xb9   : > { %532 = vst [vmem:[#allocation2] sm:$0xff] %v530_v0  ;;  %533 = vst [vmem:[#allocation2 + $0x8] sm:$0xff] %v531_v1 }
  0xba PF: > { %v1427_v2 = vld [vmem:[%s1989_s17 + $0x38] sm:$0xff]   ;;  %v1715_v3 = vmov 0.0   ;;  %v1428_v4 = vld [vmem:[%s1989_s17 + $0x30] sm:$0xff]   ;;  %vm1716_vm0 = vmmov 0   ;;  %v1429_v5 = vld [vmem:[%s1989_s17 + $0x28] sm:$0xff]   ;;  %vm657_vm1 = vcmask 130048  }
  0xbb   : > { %1219 = vmatprep.subr.bf16.mxu0 %v1715_v3  ;;  %1239 = vmatprep.subr.bf16.mxu1 %v1715_v3  ;;  %v1430_v6 = vld [vmem:[%s1989_s17 + $0x20] sm:$0xff]   ;;  %v1431_v7 = vld [vmem:[%s1989_s17 + $0x18] sm:$0xff]   ;;  %v1432_v8 = vld [vmem:[%s1989_s17 + $0x10] sm:$0xff]   ;;  %p1162_p8 = scmp.ne.s32.totalorder %s1799_s21, 5 }
  0xbc   : > { %1220 = vmatpush3.bf16.msra.mxu0 %v1427_v2  ;;  %1235 = vmatprep.mubr.msk.bf16.mxu0 %vm1716_vm0, %v1715_v3  ;;  %v1433_v9 = vld [vmem:[%s1989_s17 + $0x8] sm:$0xff]   ;;  %v1434_v10 = vld [vmem:[%s1989_s17] sm:$0xff]   ;;  %v1157_v20 = vld [vmem:[%s461_s16] ss:$0 sm:$0xff]  ;;  %s2167_s30 = sld [smem:[#allocation26_spill]] (!%p1162_p8) }
  0xbd   : > { %1221 = vmatprep.subr.bf16.mxu0 %v1715_v3  ;;  %1241 = vmatprep.mubr.msk.bf16.mxu1 %vm1716_vm0, %v1715_v3  ;;  %v1435_v19 = vld [vmem:[#allocation3] sm:$0xff]   ;;  %v1160_v23 = vld [vmem:[%s524_s2] ss:$0 sm:$0xff]  ;;  %s2168_s29 = sld [smem:[#allocation27_spill]] (!%p1162_p8) }
  0xbe   : > { %v1161_v26 = vld [vmem:[%s469_s27] ss:$0 sm:$0xff]  ;;  %s2169_s25 = sld [smem:[#allocation28_spill]] (!%p1162_p8) }
  0xc0   : > { %1222 = vmatpush3.bf16.msra.mxu0 %v1428_v4  ;;  %v534_v11 = vld [vmem:[#allocation2] sm:$0xff]  ;;  %v535_v12 = vld [vmem:[#allocation2 + $0x8] sm:$0xff] }
  0xc1   : > { %1223 = vmatprep.subr.bf16.mxu0 %v1715_v3  ;;  %v536_v13 = vpack.c.bf16 %v535_v12, %v534_v11 }
  0xc4   : > { %1224 = vmatpush3.bf16.msra.mxu0 %v1429_v5 }
  0xc5   : > { %1225 = vmatprep.subr.bf16.mxu0 %v1715_v3 }
  0xc8   : > { %1226 = vmatpush3.bf16.msra.mxu0 %v1430_v6 }
  0xc9   : > { %1227 = vmatprep.subr.bf16.mxu0 %v1715_v3 }
  0xcc   : > { %1228 = vmatpush3.bf16.msra.mxu0 %v1431_v7 }
  0xcd   : > { %1229 = vmatprep.subr.bf16.mxu0 %v1715_v3 }
  0xd0   : > { %1230 = vmatpush3.bf16.msra.mxu0 %v1432_v8 }
  0xd1   : > { %1231 = vmatprep.subr.bf16.mxu0 %v1715_v3 }
  0xd4   : > { %1232 = vmatpush3.bf16.msra.mxu0 %v1433_v9 }
  0xd5   : > { %1233 = vmatprep.subr.bf16.mxu0 %v1715_v3 }
  0xd8   : > { %1234 = vmatpush3.bf16.msra.mxu0 %v1434_v10 }
  0xdb   : > { %1236 = vmatmul.mubr.bf16.vlgmr.msra.gmra.mxu0 %v536_v13 }
 0x19b   : > { %v635_v14 = vpop.f32.mrf.mxu0 }
 0x19d   : > { %v1237_v15 = vpop.f32.mrf.mxu0 }
 0x19f   : > { %v638_v16 = vpop.f32.mrf.mxu0 }
 0x1a0   : > { %v644_v17 = vpack.c.bf16 %v638_v16, %v635_v14 }
 0x1a1   : > { %v1238_v18 = vpop.f32.mrf.mxu0 }
 0x1a2   : > { %1240 = vmatpush3.bf16.msra.mxu1 %v644_v17 }
 0x1a5   : > { %1242 = vmatmul.mubr.msk.bf16.vlgmr.msra.gmra.mxu1 %vm657_vm1, %v1435_v19 }
 0x265   : > { %v695_v21 = vpop.f32.mrf.mxu1 }
 0x266   : > { %v696_v22 = vadd.f32 %v1157_v20, %v695_v21 }
 0x267   : > { %v1243_v24 = vpop.f32.mrf.mxu1 }
 0x268   : > { %v702_v25 = vmax.f32 %v696_v22, 0.0 }
 0x269   : > { %v698_v27 = vpop.f32.mrf.mxu1 }
 0x26a   : > { %v711_v28 = vmul.f32 %v1160_v23, %v702_v25  ;;  %v699_v29 = vadd.f32 %v1157_v20, %v698_v27 }
 0x26b   : > { %v1244_v30 = vpop.f32.mrf.mxu1 }
 0x26c   : > { %v720_v31 = vadd.f32 %v1161_v26, %v711_v28  ;;  %v703_v32 = vmax.f32 %v699_v29, 0.0 }
 0x26e   : > { %722 = vst [vmem:[#allocation2] sm:$0xff] %v720_v31  ;;  %v712_v33 = vmul.f32 %v1160_v23, %v703_v32  ;;  %727 = sbr.rel (%p1162_p8) target bundleno = 1223 (0x4c7), region = 100 }
 0x270   : > { %v721_v34 = vadd.f32 %v1161_v26, %v712_v33 }
 0x272   : > { %723 = vst [vmem:[#allocation2 + $0x8] sm:$0xff] %v721_v34 }
 0x273   : > { %v1717_v36 = vmov 0.0   ;;  %vm1718_vm2 = vmmov 0   ;;  %v819_v38 = vld [vmem:[#allocation11 + $0x78] sm:$0xff]  ;;  %v728_v39 = vld [vmem:[%s2167_s30] sm:$0x3]  ;;  %v817_v41 = vld [vmem:[#allocation11 + $0x68] sm:$0xff] }
 0x274   : > { %1245 = vmatprep.subr.mxu0 %v1717_v36  ;;  %1249 = vmatprep.mubr.msk.f32.mxu0 %vm1718_vm2, %v1717_v36  ;;  %v818_v40 = vld [vmem:[#allocation11 + $0x70] sm:$0xff]  ;;  %v816_v42 = vld [vmem:[#allocation11 + $0x60] sm:$0xff]  ;;  %v815_v43 = vld [vmem:[#allocation11 + $0x58] sm:$0xff] }
 0x275   : > { %v729_v37 = vld [vmem:[#allocation2] sm:$0xff]  ;;  %1252 = vmatprep.subr.mxu1 %v1717_v36  ;;  %1284 = vmatprep.mubr.msk.f32.mxu1 %vm1718_vm2, %v1717_v36  ;;  %v813_v45 = vld [vmem:[#allocation11 + $0x48] sm:$0xff]  ;;  %v812_v46 = vld [vmem:[#allocation11 + $0x40] sm:$0xff] }
 0x276   : > { %1253 = vmatpush3.msra.mxu1 %v819_v38  ;;  %v814_v44 = vld [vmem:[#allocation11 + $0x50] sm:$0xff]  ;;  %v811_v47 = vld [vmem:[#allocation11 + $0x38] sm:$0xff]  ;;  %v809_v49 = vld [vmem:[#allocation11 + $0x28] sm:$0xff] }
 0x277   : > { %1254 = vmatprep.subr.mxu1 %v1717_v36  ;;  %v810_v48 = vld [vmem:[#allocation11 + $0x30] sm:$0xff]  ;;  %v808_v50 = vld [vmem:[#allocation11 + $0x20] sm:$0xff]  ;;  %v807_v51 = vld [vmem:[#allocation11 + $0x18] sm:$0xff] }
 0x278   : > { %1255 = vmatpush3.msra.mxu1 %v818_v40  ;;  %v806_v52 = vld [vmem:[#allocation11 + $0x10] sm:$0xff]  ;;  %v805_v53 = vld [vmem:[#allocation11 + $0x8] sm:$0xff]  ;;  %v804_v54 = vld [vmem:[#allocation11] sm:$0xff] }
 0x279   : > { %v730_v35 = vld [vmem:[#allocation2 + $0x8] sm:$0xff]  ;;  %1256 = vmatprep.subr.mxu1 %v1717_v36  ;;  %v912_v56 = vld [vmem:[#allocation12 + $0x70] sm:$0xff]  ;;  %v911_v57 = vld [vmem:[#allocation12 + $0x68] sm:$0xff] }
 0x27a   : > { %1246 = vmatpush3.msra.mxu0 %v730_v35  ;;  %1257 = vmatpush3.msra.mxu1 %v817_v41  ;;  %v913_v55 = vld [vmem:[#allocation12 + $0x78] sm:$0xff]  ;;  %v910_v58 = vld [vmem:[#allocation12 + $0x60] sm:$0xff]  ;;  %v908_v60 = vld [vmem:[#allocation12 + $0x50] sm:$0xff] }
 0x27b   : > { %1247 = vmatprep.subr.mxu0 %v1717_v36  ;;  %1258 = vmatprep.subr.mxu1 %v1717_v36  ;;  %v909_v59 = vld [vmem:[#allocation12 + $0x58] sm:$0xff]  ;;  %v907_v61 = vld [vmem:[#allocation12 + $0x48] sm:$0xff]  ;;  %v906_v62 = vld [vmem:[#allocation12 + $0x40] sm:$0xff] }
 0x27c   : > { %1248 = vmatpush3.msra.mxu0 %v729_v37  ;;  %1259 = vmatpush3.msra.mxu1 %v816_v42  ;;  %v905_v63 = vld [vmem:[#allocation12 + $0x38] sm:$0xff]  ;;  %v904_v0 = vld [vmem:[#allocation12 + $0x30] sm:$0xff]  ;;  %v903_v1 = vld [vmem:[#allocation12 + $0x28] sm:$0xff] }
 0x27d   : > { %1250 = vmatmul.mubr.msk.f32.vlgmr.msra.gmra.mxu0 %vm657_vm1, %v728_v39  ;;  %1287 = vmatprep.subr.mxu0 %v1717_v36  ;;  %v902_v2 = vld [vmem:[#allocation12 + $0x20] sm:$0xff]  ;;  %v901_v3 = vld [vmem:[#allocation12 + $0x18] sm:$0xff]  ;;  %v900_v6 = vld [vmem:[#allocation12 + $0x10] sm:$0xff] }
 0x27e   : > { %1319 = vmatprep.mubr.msk.f32.mxu0 %vm1718_vm2, %v1717_v36  ;;  %1260 = vmatprep.subr.mxu1 %v1717_v36  ;;  %v899_v7 = vld [vmem:[#allocation12 + $0x8] sm:$0xff]  ;;  %v898_v8 = vld [vmem:[#allocation12] sm:$0xff]  ;;  %v1164_v9 = vld [vmem:[%s2168_s29] ss:$0 sm:$0xff] }
 0x27f   : > { %1261 = vmatpush3.msra.mxu1 %v815_v43  ;;  %1288 = vmatpush3.msra.mxu0 %v913_v55  ;;  %v1165_v14 = vld [vmem:[%s2169_s25] ss:$0 sm:$0xff] }
 0x280   : > { %1262 = vmatprep.subr.mxu1 %v1717_v36  ;;  %1289 = vmatprep.subr.mxu0 %v1717_v36 }
 0x281   : > { %1263 = vmatpush3.msra.mxu1 %v814_v44  ;;  %1290 = vmatpush3.msra.mxu0 %v912_v56 }
 0x282   : > { %1264 = vmatprep.subr.mxu1 %v1717_v36  ;;  %1291 = vmatprep.subr.mxu0 %v1717_v36 }
 0x283   : > { %1265 = vmatpush3.msra.mxu1 %v813_v45  ;;  %1292 = vmatpush3.msra.mxu0 %v911_v57 }
 0x284   : > { %1266 = vmatprep.subr.mxu1 %v1717_v36  ;;  %1293 = vmatprep.subr.mxu0 %v1717_v36 }
 0x285   : > { %1267 = vmatpush3.msra.mxu1 %v812_v46  ;;  %1294 = vmatpush3.msra.mxu0 %v910_v58 }
 0x286   : > { %1268 = vmatprep.subr.mxu1 %v1717_v36  ;;  %1295 = vmatprep.subr.mxu0 %v1717_v36 }
 0x287   : > { %1269 = vmatpush3.msra.mxu1 %v811_v47  ;;  %1296 = vmatpush3.msra.mxu0 %v909_v59 }
 0x288   : > { %1270 = vmatprep.subr.mxu1 %v1717_v36  ;;  %1297 = vmatprep.subr.mxu0 %v1717_v36 }
 0x289   : > { %1271 = vmatpush3.msra.mxu1 %v810_v48  ;;  %1298 = vmatpush3.msra.mxu0 %v908_v60 }
 0x28a   : > { %1272 = vmatprep.subr.mxu1 %v1717_v36  ;;  %1299 = vmatprep.subr.mxu0 %v1717_v36 }
 0x28b   : > { %1273 = vmatpush3.msra.mxu1 %v809_v49  ;;  %1300 = vmatpush3.msra.mxu0 %v907_v61 }
 0x28c   : > { %1274 = vmatprep.subr.mxu1 %v1717_v36  ;;  %1301 = vmatprep.subr.mxu0 %v1717_v36 }
 0x28d   : > { %1275 = vmatpush3.msra.mxu1 %v808_v50  ;;  %1302 = vmatpush3.msra.mxu0 %v906_v62 }
 0x28e   : > { %1276 = vmatprep.subr.mxu1 %v1717_v36  ;;  %1303 = vmatprep.subr.mxu0 %v1717_v36 }
 0x28f   : > { %1277 = vmatpush3.msra.mxu1 %v807_v51  ;;  %1304 = vmatpush3.msra.mxu0 %v905_v63 }
 0x290   : > { %1278 = vmatprep.subr.mxu1 %v1717_v36  ;;  %1305 = vmatprep.subr.mxu0 %v1717_v36 }
 0x291   : > { %1279 = vmatpush3.msra.mxu1 %v806_v52  ;;  %1306 = vmatpush3.msra.mxu0 %v904_v0 }
 0x292   : > { %1280 = vmatprep.subr.mxu1 %v1717_v36  ;;  %1307 = vmatprep.subr.mxu0 %v1717_v36 }
 0x293   : > { %1281 = vmatpush3.msra.mxu1 %v805_v53  ;;  %1308 = vmatpush3.msra.mxu0 %v903_v1 }
 0x294   : > { %1282 = vmatprep.subr.mxu1 %v1717_v36  ;;  %1309 = vmatprep.subr.mxu0 %v1717_v36 }
 0x295   : > { %1283 = vmatpush3.msra.mxu1 %v804_v54  ;;  %1310 = vmatpush3.msra.mxu0 %v902_v2 }
 0x296   : > { %1311 = vmatprep.subr.mxu0 %v1717_v36 }
 0x297   : > { %1312 = vmatpush3.msra.mxu0 %v901_v3 }
 0x298   : > { %1313 = vmatprep.subr.mxu0 %v1717_v36 }
 0x299   : > { %1314 = vmatpush3.msra.mxu0 %v900_v6 }
 0x29a   : > { %1315 = vmatprep.subr.mxu0 %v1717_v36 }
 0x29b   : > { %1316 = vmatpush3.msra.mxu0 %v899_v7 }
 0x29c   : > { %1317 = vmatprep.subr.mxu0 %v1717_v36 }
 0x29d   : > { %1318 = vmatpush3.msra.mxu0 %v898_v8 }
 0x33d   : > { %v800_v4 = vpop.f32.mrf.mxu0 }
 0x33e   : > { %1285 = vmatmul.mubr.f32.vlgmr.msra.gmra.mxu1 %v800_v4 }
 0x33f   : > { %v1251_v5 = vpop.f32.mrf.mxu0 }
 0x3fe   : > { %v893_v10 = vpop.f32.mrf.mxu1 }
 0x3ff   : > { %v894_v11 = vadd.f32 %v1164_v9, %v893_v10 }
 0x400   : > { %v1286_v12 = vpop.f32.mrf.mxu1 }
 0x401   : > { %v897_v13 = vmax.f32 %v894_v11, 0.0 }
 0x403   : > { %1320 = vmatmul.mubr.f32.vlgmr.msra.gmra.mxu0 %v897_v13 }
 0x4c3   : > { %v987_v15 = vpop.f32.mrf.mxu0 }
 0x4c4   : > { %v988_v16 = vadd.f32 %v1165_v14, %v987_v15 }
 0x4c5   : > { %v1321_v17 = vpop.f32.mrf.mxu0 }
 0x4c6   : > { %991 = vst [vmem:[#allocation14] sm:$0x3] %v988_v16 }
 0x4c7 PF: > { %p1380_p4 = scmp.eq.s32.totalorder %s1799_s21, 5  ;;  %s1719_s14 = smov [#allocation14]  }
 0x4c8   : > { %s999_s28 = sshll.u32 %s1719_s14, 4  ;;  %s1000_s28 = int_to_ptr.vmem [resolvable:$true] %s999_s28 }
 0x4c9   : > { %s1624_s12 = scalar_lea.vmem %s1000_s28, 32  ;;  %p1631_p12 = scmp.lt.s32.totalorder %s1000_s28, %s1000_s28 }
 0x4ca   : > { %p1625_p9 = scmp.ne.s32.totalorder %s1000_s28, %s1624_s12  ;;  %p1632_p13 = scmp.lt.s32.totalorder %s1624_s12, %s1624_s12 }
 0x4cc   : > { %p1626_p1 = pnand %p1625_p9, %p1380_p4  ;;  %p1633_p0 = por %p1632_p13, %p1631_p12 }
 0x4ce   : > { %p1627_p3 = pneg %p1626_p1 }
 0x4d0   : > { %p1634_p2 = pnand %p1633_p0, %p1627_p3 }
 0x4d2   : > { %1637 = shalt.err (!%p1634_p2)
}
 0x4d3   : > { %s2170_s17 = sld [smem:[#allocation29_spill]] }
 0x4d9   : > { %1345 = dma.vmem_to_hbm [thread:$0]  (%p1380_p4), %s1000_s28, 32, %s2170_s17, [#allocation5]  }
 0x4da   : > { %1685 = dma.done.wait (%p1380_p4), [#allocation5], 32  }
 0x4db   : > { %1687 = vsyncadd (%p1380_p4), [#allocation5], 4294967264 }
 0x4dc PF: > { %s2171_s20 = sld [smem:[#allocation22_spill]]  ;;  %s2174_s17 = smov %s1694_s18 }
 0x4dd   : > { %s2172_s16 = sld [smem:[#allocation21_spill]] }
 0x4de   : > { %s2173_s19 = sld [smem:[#allocation23_spill]] }
 0x4e2   : > { %p22_p7 = scmp.ge.s32.totalorder %s2171_s20, 8  }
 0x4e3   : > { %s2175_s18 = smov %s2172_s16 }
 0x4e4   :  { %24 = sbr.rel (!%p22_p7) target bundleno = 12 (0xc), region = 149 }
 0x4e9   :  { %1012 = vsyncpa [#allocation4], 1 }
 0x4ea   :  { %1014 = vsyncpa [#allocation4 + $0x1], 1 }
 0x4eb   :  { %1015 = vsyncpa [#allocation7], 1 }
 0x4ec   :  { %1016 = vsyncpa [#allocation13], 1 }
 0x4ed   :  { %1017 = vsyncpa [#allocation5], 1 }
 0x4ee   :  { %1019 = vsyncpa [#allocation5 + $0x1], 1 }

</bundles_post_ra>
